<compile_context>
chip_gen: v6e
topology: v6e:2x2x1
jax: 0.10.0
libtpu: 0.0.40
codegen_flags: <defaults>
</compile_context>

<pallas_src>
import functools

import jax
import jax.numpy as jnp
from jax import lax
from jax.experimental import pallas as pl
from jax.experimental.pallas import tpu as pltpu


def _round_up(v, m):
    return (v + m - 1) // m * m


def _cdiv(a, b):
    return (a + b - 1) // b


def rbf_kan_kernel(alpha_ref, x_ref, ct_ref, csq_ref, w_ref, o_ref, acc_ref,
                   *, row_chunk):
    """Grid = (batch tile i [parallel], center tile k [arbitrary, reduction])."""
    k = pl.program_id(1)
    nk = pl.num_programs(1)

    @pl.when(k == 0)
    def _init():
        acc_ref[...] = jnp.zeros_like(acc_ref)

    alpha = alpha_ref[0]                       # SMEM scalar (runtime alpha)
    n_chunks = x_ref.shape[0] // row_chunk     # static

    def body(j, carry):
        r = pl.multiple_of(j * row_chunk, row_chunk)
        xj = x_ref[pl.ds(r, row_chunk), :].astype(jnp.float32)      # (rc, D)
        # alpha*||x||^2: lane reduce (XLU) + tiny (rc,1) scalar multiply.
        x_sq = alpha * jnp.sum(xj * xj, axis=-1, keepdims=True)     # (rc, 1)
        # x @ (2*alpha*centers^T): kept f32 on the MXU (D is the small
        # contraction) to avoid bf16 cancellation in the distance expansion.
        xc = jnp.dot(xj, ct_ref[...], preferred_element_type=jnp.float32)
        # arg = alpha * squared distance (clamp tiny FP negatives).
        arg = jnp.maximum(x_sq + csq_ref[...] - xc, 0.0)            # (rc, tc)
        basis = jnp.exp(-arg)                                       # EUP
        # Reduction over centers: bf16 (weights' dtype) on the MXU, f32 acc.
        w = w_ref[...]
        acc_ref[pl.ds(r, row_chunk), :] += jnp.dot(
            basis.astype(w.dtype), w, preferred_element_type=jnp.float32)
        return carry

    # Unrolled row sub-chunks: lets MXU (xc / basis@w) overlap EUP (exp).
    lax.fori_loop(0, n_chunks, body, 0, unroll=True)

    @pl.when(k == nk - 1)
    def _finalize():
        o_ref[...] = acc_ref[...].astype(o_ref.dtype)


def rbf_kan_forward(x, centers, weights, *, alpha=1.0, block_b=512,
                    block_c=1024, weights_dtype=jnp.bfloat16):
    """x: (..., input_dim); centers: (num_centers, input_dim);
    weights: (num_centers, output_dim)."""
    num_centers, input_dim = centers.shape
    output_dim = weights.shape[1]

    orig_shape = x.shape
    x2d = x.reshape(-1, input_dim)
    B = x2d.shape[0]
    out_dtype = x.dtype

    block_b = max(8, _round_up(block_b, 8))
    block_c = max(128, _round_up(block_c, 128))

    # ---- center / output padding (lane-dense, multiples of 128) ------------
    o_pad = _round_up(output_dim, 128)
    c_pad = _round_up(num_centers, 128)
    if c_pad > block_c:
        c_pad = _round_up(c_pad, block_c)
        tc = block_c
    else:
        tc = c_pad
    n_c = c_pad // tc
    resident = (n_c == 1)   # params have constant index maps

    # ---- one-time parameter prep (init-time layout plumbing in a real model)
    centers_f32 = centers.astype(jnp.float32)
    # x @ ct gives 2*alpha*(x . c); padded columns are zero.
    ct = jnp.pad((2.0 * alpha) * centers_f32.T,
                 ((0, 0), (0, c_pad - num_centers)))
    # alpha*||c||^2; padded lanes get a huge value so exp(-arg) -> 0 there.
    csq = jnp.pad((alpha * jnp.sum(centers_f32 * centers_f32, axis=1))[None, :],
                  ((0, 0), (0, c_pad - num_centers)), constant_values=1e30)
    # Padded (fake) center rows are zero; weights feed the MXU in bf16 by
    # default (f32 accumulation inside the kernel).
    w_p = jnp.pad(weights.astype(jnp.float32),
                  ((0, c_pad - num_centers), (0, o_pad - output_dim))
                  ).astype(weights_dtype)
    alpha_arr = jnp.full((1,), alpha, dtype=jnp.float32)

    # ---- batch tiling -------------------------------------------------------
    tb = min(block_b, _round_up(B, 8))
    # Keep >= 2 batch tiles when there is enough work so the "parallel" batch
    # axis can shard across both TensorCores (v7x megacore).
    if _cdiv(B, tb) < 2 and tb > 256:
        tb = _round_up(_cdiv(B, 2), 8)
    b_pad = _round_up(B, tb)
    if b_pad != B:
        x2d = jnp.pad(x2d, ((0, b_pad - B), (0, 0)))
    n_b = b_pad // tb

    # In-kernel row sub-chunk size (must divide tb).
    if tb % 256 == 0:
        row_chunk = 256
    elif tb % 128 == 0:
        row_chunk = 128
    else:
        row_chunk = tb

    # ---- BlockSpecs ---------------------------------------------------------
    def _param_spec(shape, index_map):
        # Constant-index-map params never change block -> single-buffer them
        # (halves resident VMEM; matters on v7x's 64 MiB).
        if resident:
            try:
                return pl.BlockSpec(shape, index_map,
                                    pipeline_mode=pl.Buffered(1))
            except Exception:   # older jax without pipeline_mode / Buffered
                pass
        return pl.BlockSpec(shape, index_map)

    in_specs = [
        pl.BlockSpec(memory_space=pltpu.MemorySpace.SMEM),          # alpha
        pl.BlockSpec((tb, input_dim), lambda i, k: (i, 0)),         # x (streamed)
        _param_spec((input_dim, tc), lambda i, k: (0, k)),          # 2*alpha*centers^T
        _param_spec((1, tc), lambda i, k: (0, k)),                  # alpha*||c||^2
        _param_spec((tc, o_pad), lambda i, k: (k, 0)),              # weights
    ]
    out_specs = pl.BlockSpec((tb, o_pad), lambda i, k: (i, 0))      # lane-dense

    # ---- VMEM budget --------------------------------------------------------
    x_bytes = jnp.dtype(x2d.dtype).itemsize
    w_bytes = jnp.dtype(weights_dtype).itemsize
    o_bytes = jnp.dtype(out_dtype).itemsize
    nbuf = 1 if resident else 2
    est = (2 * tb * input_dim * x_bytes            # x, double buffered
           + nbuf * input_dim * tc * 4             # centers^T
           + nbuf * 8 * tc * 4                     # ||c||^2 (8-sublane padded)
           + nbuf * tc * o_pad * w_bytes           # weights
           + 2 * tb * o_pad * o_bytes              # out, double buffered
           + tb * o_pad * 4                        # f32 accumulator scratch
           + 2 * row_chunk * tc * 4)               # xc / basis intermediates
    # Raise scoped VMEM above v5e's 16 MiB default; stay under v7x's 64 MiB.
    vmem_limit = int(min(56 * 2 ** 20, max(32 * 2 ** 20, 2 * est)))

    kernel = functools.partial(rbf_kan_kernel, row_chunk=row_chunk)

    y2d = pl.pallas_call(
        kernel,
        out_shape=jax.ShapeDtypeStruct((b_pad, o_pad), out_dtype),
        grid_spec=pltpu.PrefetchScalarGridSpec(
            num_scalar_prefetch=0,
            grid=(n_b, n_c),
            in_specs=in_specs,
            out_specs=out_specs,
            scratch_shapes=[pltpu.VMEM((tb, o_pad), jnp.float32)],
        ),
        compiler_params=pltpu.CompilerParams(
            dimension_semantics=("parallel", "arbitrary"),
            vmem_limit_bytes=vmem_limit,
        ),
    )(alpha_arr, x2d, ct, csq, w_p)

    return y2d[:B, :output_dim].reshape(orig_shape[:-1] + (output_dim,))


def rbf_kan_reference(x, centers, weights, alpha=1.0):
    """Pure-JAX reference mirroring the PyTorch forward (cdist -> exp -> sum)."""
    input_dim = centers.shape[1]
    output_dim = weights.shape[1]
    x2d = x.reshape(-1, input_dim).astype(jnp.float32)
    diff = x2d[:, None, :] - centers[None, :, :].astype(jnp.float32)
    dist = jnp.sqrt(jnp.sum(diff * diff, axis=-1))            # cdist
    basis = jnp.exp(-alpha * dist * dist)                     # gaussian_rbf
    out = basis @ weights.astype(jnp.float32)                 # sum_c basis * w
    return out.reshape(x.shape[:-1] + (output_dim,)).astype(x.dtype)


if __name__ == "__main__":
    # Small shapes consistent with the module's 2-D forward: x is (batch, input_dim).
    input_dim, output_dim, num_centers = 32, 48, 64
    alpha = 0.1
    batch = 16

    key = jax.random.PRNGKey(0)
    kx, kc, kw = jax.random.split(key, 3)

    x = 0.5 * jax.random.normal(kx, (batch, input_dim), dtype=jnp.float32)
    # xavier_uniform-style deterministic init for the parameters.
    bound_c = (6.0 / (num_centers + input_dim)) ** 0.5
    centers = jax.random.uniform(kc, (num_centers, input_dim),
                                 minval=-bound_c, maxval=bound_c,
                                 dtype=jnp.float32)
    bound_w = (6.0 / (num_centers + output_dim)) ** 0.5
    weights = jax.random.uniform(kw, (num_centers, output_dim),
                                 minval=-bound_w, maxval=bound_w,
                                 dtype=jnp.float32)

    y_ref = rbf_kan_reference(x, centers, weights, alpha=alpha)

    # Exact path (f32 weights / f32 second matmul): tight check of the math.
    y_f32 = rbf_kan_forward(x, centers, weights, alpha=alpha,
                            weights_dtype=jnp.float32)
    y_f32 = jax.block_until_ready(y_f32)
    assert y_f32.shape == (batch, output_dim), y_f32.shape
    assert jnp.allclose(y_f32, y_ref, atol=2e-4, rtol=2e-4), \
        float(jnp.max(jnp.abs(y_f32 - y_ref)))

    # Default fast path: bf16 weights/basis on the MXU, f32 accumulation.
    y = rbf_kan_forward(x, centers, weights, alpha=alpha)
    y = jax.block_until_ready(y)
    assert y.shape == (batch, output_dim), y.shape
    assert jnp.allclose(y, y_ref, atol=3e-2, rtol=3e-2), \
        float(jnp.max(jnp.abs(y - y_ref)))

    print("KERNEL_OK")
</pallas_src>

<mosaic_0001>
module attributes {stable_mosaic.version = 11 : i64} {
  func.func @rbf_kan_kernel(%arg0: i32, %arg1: i32, %arg2: memref<1xf32, #tpu.memory_space<smem>>, %arg3: memref<16x32xf32, #tpu.memory_space<vmem>>, %arg4: memref<32x128xf32, #tpu.memory_space<vmem>>, %arg5: memref<1x128xf32, #tpu.memory_space<vmem>>, %arg6: memref<128x128xf32, #tpu.memory_space<vmem>>, %arg7: memref<16x128xf32, #tpu.memory_space<vmem>>, %arg8: memref<16x128xf32, #tpu.memory_space<vmem>>) attributes {dimension_semantics = [#tpu.dimension_semantics<parallel>, #tpu.dimension_semantics<arbitrary>], iteration_bounds = array<i64: 1, 1>, scalar_prefetch = 0 : i64, scratch_operands = 1 : i64, tpu.core_type = #tpu.core_type<tc>, window_params = [{transform_indices = @transform_0, window_bounds = array<i64: 1>}, {transform_indices = @transform_1, window_bounds = array<i64: 16, 32>}, {pipeline_mode = #tpu.pipeline_mode<synchronous>, transform_indices = @transform_2, window_bounds = array<i64: 32, 128>}, {pipeline_mode = #tpu.pipeline_mode<synchronous>, transform_indices = @transform_3, window_bounds = array<i64: 1, 128>}, {pipeline_mode = #tpu.pipeline_mode<synchronous>, transform_indices = @transform_4, window_bounds = array<i64: 128, 128>}, {transform_indices = @transform_5, window_bounds = array<i64: 16, 128>}]} {
    %c0_i32 = arith.constant 0 : i32
    %0 = arith.cmpi eq, %arg1, %c0_i32 : i32
    %1 = arith.extui %0 : i1 to i32
    %c0_i32_0 = arith.constant 0 : i32
    %2 = arith.cmpi ne, %1, %c0_i32_0 : i32
    scf.if %2 {
      %cst_17 = arith.constant 0.000000e+00 : f32
      %35 = vector.broadcast %cst_17 : f32 to vector<16x128xf32>
      %c0_18 = arith.constant 0 : index
      %c0_19 = arith.constant 0 : index
      %36 = vector.load %arg8[%c0_18, %c0_19] : memref<16x128xf32, #tpu.memory_space<vmem>>, vector<16x128xf32>
      tpu.vector_store %arg8[%c0_18, %c0_19], %35 {strides = array<i32>} : memref<16x128xf32, #tpu.memory_space<vmem>>, vector<16x128xf32>,
    } else {
    }
    %c0 = arith.constant 0 : index
    %3 = memref.load %arg2[%c0] : memref<1xf32, #tpu.memory_space<smem>>
    %c0_i32_1 = arith.constant 0 : i32
    %c16_i32 = arith.constant 16 : i32
    %4 = arith.muli %c0_i32_1, %c16_i32 : i32
    %5 = tpu.assume_multiple %4, 16 : i32
    %6 = arith.index_cast %5 : i32 to index
    %c0_2 = arith.constant 0 : index
    %7 = vector.load %arg3[%6, %c0_2] : memref<16x32xf32, #tpu.memory_space<vmem>>, vector<16x32xf32>
    %8 = arith.mulf %7, %7 : vector<16x32xf32>
    %cst = arith.constant dense<0.000000e+00> : vector<16xf32>
    %9 = vector.multi_reduction <add>, %8, %cst [1] : vector<16x32xf32> to vector<16xf32>
    %10 = vector.shape_cast %9 : vector<16xf32> to vector<16x1xf32>
    %11 = vector.broadcast %3 : f32 to vector<16x1xf32>
    %12 = arith.mulf %11, %10 : vector<16x1xf32>
    %c0_3 = arith.constant 0 : index
    %c0_4 = arith.constant 0 : index
    %13 = vector.load %arg4[%c0_3, %c0_4] : memref<32x128xf32, #tpu.memory_space<vmem>>, vector<32x128xf32>
    %cst_5 = arith.constant dense<0.000000e+00> : vector<16x128xf32>
    %14 = tpu.matmul %7, %13, %cst_5 {dimension_numbers = #tpu.dot_dimension_numbers<[1], [0], [0], [1], [0, 0, 1, 1], [], []>} : vector<16x32xf32>, vector<32x128xf32>, vector<16x128xf32> -> vector<16x128xf32>
    %c0_6 = arith.constant 0 : index
    %c0_7 = arith.constant 0 : index
    %15 = vector.load %arg5[%c0_6, %c0_7] : memref<1x128xf32, #tpu.memory_space<vmem>>, vector<1x128xf32>
    %16 = vector.broadcast %12 : vector<16x1xf32> to vector<16x128xf32>
    %17 = vector.broadcast %15 : vector<1x128xf32> to vector<16x128xf32>
    %18 = arith.addf %16, %17 : vector<16x128xf32>
    %19 = arith.subf %18, %14 : vector<16x128xf32>
    %cst_8 = arith.constant 0.000000e+00 : f32
    %20 = vector.broadcast %cst_8 : f32 to vector<16x128xf32>
    %21 = arith.maximumf %19, %20 : vector<16x128xf32>
    %cst_9 = arith.constant 0.000000e+00 : f32
    %22 = vector.broadcast %cst_9 : f32 to vector<16x128xf32>
    %23 = arith.subf %22, %21 : vector<16x128xf32>
    %24 = math.exp %23 : vector<16x128xf32>
    %c0_10 = arith.constant 0 : index
    %c0_11 = arith.constant 0 : index
    %25 = vector.load %arg6[%c0_10, %c0_11] : memref<128x128xf32, #tpu.memory_space<vmem>>, vector<128x128xf32>
    %26 = arith.index_cast %5 : i32 to index
    %c0_12 = arith.constant 0 : index
    %27 = vector.load %arg8[%26, %c0_12] : memref<16x128xf32, #tpu.memory_space<vmem>>, vector<16x128xf32>
    %cst_13 = arith.constant dense<0.000000e+00> : vector<16x128xf32>
    %28 = tpu.matmul %24, %25, %cst_13 {dimension_numbers = #tpu.dot_dimension_numbers<[1], [0], [0], [1], [0, 0, 1, 1], [], []>} : vector<16x128xf32>, vector<128x128xf32>, vector<16x128xf32> -> vector<16x128xf32>
    %29 = arith.addf %27, %28 : vector<16x128xf32>
    %30 = arith.index_cast %5 : i32 to index
    %c0_14 = arith.constant 0 : index
    %31 = vector.load %arg8[%30, %c0_14] : memref<16x128xf32, #tpu.memory_space<vmem>>, vector<16x128xf32>
    tpu.vector_store %arg8[%30, %c0_14], %29 {strides = array<i32>} : memref<16x128xf32, #tpu.memory_space<vmem>>, vector<16x128xf32>,
    %c1_i32 = arith.constant 1 : i32
    %c0_i32_15 = arith.constant 0 : i32
    %32 = arith.cmpi eq, %arg1, %c0_i32_15 : i32
    %33 = arith.extui %32 : i1 to i32
    %c0_i32_16 = arith.constant 0 : i32
    %34 = arith.cmpi ne, %33, %c0_i32_16 : i32
    scf.if %34 {
      %c0_17 = arith.constant 0 : index
      %c0_18 = arith.constant 0 : index
      %35 = vector.load %arg8[%c0_17, %c0_18] : memref<16x128xf32, #tpu.memory_space<vmem>>, vector<16x128xf32>
      %c0_19 = arith.constant 0 : index
      %c0_20 = arith.constant 0 : index
      %36 = vector.load %arg7[%c0_19, %c0_20] : memref<16x128xf32, #tpu.memory_space<vmem>>, vector<16x128xf32>
      tpu.vector_store %arg7[%c0_19, %c0_20], %35 {strides = array<i32>} : memref<16x128xf32, #tpu.memory_space<vmem>>, vector<16x128xf32>,
    } else {
    }
    return
  }
  func.func @transform_0(%arg0: i32, %arg1: i32) -> i32 {
    %c0_i32 = arith.constant 0 : i32
    %c0_i32_0 = arith.constant 0 : i32
    return %c0_i32 : i32
  }
  func.func @transform_1(%arg0: i32, %arg1: i32) -> (i32, i32) {
    %c0_i32 = arith.constant 0 : i32
    %c0_i32_0 = arith.constant 0 : i32
    return %arg0, %c0_i32 : i32, i32
  }
  func.func @transform_2(%arg0: i32, %arg1: i32) -> (i32, i32) {
    %c0_i32 = arith.constant 0 : i32
    %c0_i32_0 = arith.constant 0 : i32
    return %c0_i32, %arg1 : i32, i32
  }
  func.func @transform_3(%arg0: i32, %arg1: i32) -> (i32, i32) {
    %c0_i32 = arith.constant 0 : i32
    %c0_i32_0 = arith.constant 0 : i32
    return %c0_i32, %arg1 : i32, i32
  }
  func.func @transform_4(%arg0: i32, %arg1: i32) -> (i32, i32) {
    %c0_i32 = arith.constant 0 : i32
    %c0_i32_0 = arith.constant 0 : i32
    return %arg1, %c0_i32 : i32, i32
  }
  func.func @transform_5(%arg0: i32, %arg1: i32) -> (i32, i32) {
    %c0_i32 = arith.constant 0 : i32
    %c0_i32_0 = arith.constant 0 : i32
    return %arg0, %c0_i32 : i32, i32
  }
}

</mosaic_0001>

<bundles_post_ra>
// kernel: tpu_custom_call.1
= control target key start
LH: loop header
LB: loop body
LE: loop exit
PB: predicated region body
PF: predicated region fallthrough
CT: control target
= control target key end

     0   :  { %11 = vsyncpa [#allocation5], 0  ;;  %s549_s0 = inlined_call_operand.<no memory space> [shape: f32[1], index: 0, kind: input, shape index: {}]   ;;  %s550_s1 = inlined_call_operand.hbm [shape: f32[16,32], index: 1, kind: input, shape index: {}]   ;;  %s551_s2 = inlined_call_operand.hbm [shape: f32[32,128], index: 2, kind: input, shape index: {}]   ;;  %s552_s3 = inlined_call_operand.vmem [shape: f32[1,128], index: 3, kind: input, shape index: {}]   ;;  %s553_s4 = inlined_call_operand.hbm [shape: f32[128,128], index: 4, kind: input, shape index: {}]   ;;  %s554_s5 = inlined_call_operand.hbm [shape: f32[16,128], index: 5, kind: output, shape index: {}]  }
   0x1   :  { %12 = vsyncpa [#allocation8], 0 }
   0x2   :  { %13 = vsyncpa [#allocation6], 0  ;;  %s479_s18 = smov [#allocation7]   ;;  %s480_s20 = smov [#allocation4]  }
   0x3   :  { %s33_s19 = sshll.u32 %s479_s18, 4  ;;  %s21_s21 = sshll.u32 %s480_s20, 4  ;;  %s34_s19 = int_to_ptr.vmem [resolvable:$true] %s33_s19  ;;  %s22_s21 = int_to_ptr.vmem [resolvable:$true] %s21_s21 }
   0x4   :  { %s401_s22 = scalar_lea.vmem %s34_s19, 512  ;;  %p406_p1 = scmp.lt.s32.totalorder %s34_s19, %s34_s19 }
   0x5   :  { %p402_p0 = scmp.ne.s32.totalorder %s34_s19, %s401_s22  ;;  %p407_p2 = scmp.lt.s32.totalorder %s401_s22, %s401_s22 }
   0x7   :  { %p408_p3 = por %p407_p2, %p406_p1 }
   0x9   :  { %p409_p4 = pnand %p408_p3, %p402_p0 }
   0xb   :  { %412 = shalt.err (!%p409_p4)
}
   0xc   :  { %s481_s23 = smov 128   ;;  %s482_s24 = smov 8  }
   0xd   :  { %39 = dma.hbm_to_vmem [thread:$0]  %s551_s2, 512, %s34_s19, [#allocation8], %s481_s23, %s481_s23, %s482_s24  }
   0xe   :  { %s421_s27 = scalar_lea.vmem %s22_s21, 256  ;;  %p426_p6 = scmp.lt.s32.totalorder %s22_s21, %s22_s21 }
   0xf   :  { %p422_p5 = scmp.ne.s32.totalorder %s22_s21, %s421_s27  ;;  %p427_p7 = scmp.lt.s32.totalorder %s421_s27, %s421_s27 }
  0x11   :  { %p428_p8 = por %p427_p7, %p426_p6 }
  0x13   :  { %p429_p9 = pnand %p428_p8, %p422_p5 }
  0x15   :  { %432 = shalt.err (!%p429_p9)
}
  0x16   :  { %27 = dma.hbm_to_vmem [thread:$0]  %s550_s1, 256, %s22_s21, [#allocation5], %s481_s23, %s481_s23, %s482_s24  }
  0x17   :  { %s483_s30 = smov [#allocation9]  }
  0x18   :  { %s47_s6 = sshll.u32 %s483_s30, 4  ;;  %s48_s6 = int_to_ptr.vmem [resolvable:$true] %s47_s6 }
  0x19   :  { %s441_s7 = scalar_lea.vmem %s48_s6, 2048  ;;  %p446_p11 = scmp.lt.s32.totalorder %s48_s6, %s48_s6 }
  0x1a   :  { %p442_p10 = scmp.ne.s32.totalorder %s48_s6, %s441_s7  ;;  %p447_p12 = scmp.lt.s32.totalorder %s441_s7, %s441_s7 }
  0x1c   :  { %p448_p13 = por %p447_p12, %p446_p11 }
  0x1e   :  { %p449_p0 = pnand %p448_p13, %p442_p10 }
  0x20   :  { %452 = shalt.err (!%p449_p0)
}
  0x21   :  { %53 = dma.hbm_to_vmem [thread:$0]  %s553_s4, 2048, %s48_s6, [#allocation8], %s481_s23, %s481_s23, %s482_s24  }
  0x22   :  { %473 = dma.done.wait [#allocation5], 256  }
  0x23   :  { %474 = vsyncadd [#allocation5], 4294967040 }
  0x24   :  { %475 = dma.done.wait [#allocation8], 2560  }
  0x25   :  { %476 = vsyncadd [#allocation8], 4294964736  ;;  %vm74_vm0 = vcmask 261120   ;;  %v87_v0 = vld [vmem:[#allocation7 + $0x18] sm:$0xff]  ;;  %v86_v1 = vld [vmem:[#allocation7 + $0x10] sm:$0xff]  ;;  %v81_v27 = vstv %s549_s0  ;;  %s484_s0 = smov [#allocation10]  }
  0x26   :  { %337 = vmatprep.subr.mxu0 %v87_v0  ;;  %v70_v2 = vld [vmem:[#allocation4] sm:$0xff]  ;;  %v71_v3 = vld [vmem:[#allocation4 + $0x8] sm:$0xff]  ;;  %v85_v4 = vld [vmem:[#allocation7 + $0x8] sm:$0xff] }
  0x27   :  { %338 = vmatpush3.msra.mxu0 %v87_v0  ;;  %v72_v5 = vmul.f32 %v70_v2, %v70_v2  ;;  %345 = vmatprep.mubr.msk.f32.mxu0 %vm74_vm0, %v70_v2  ;;  %v73_v6 = vmul.f32 %v71_v3, %v71_v3  ;;  %v84_v7 = vld [vmem:[#allocation7] sm:$0xff]  ;;  %v203_v10 = vld [vmem:[#allocation9 + $0x78] sm:$0xff]  ;;  %v202_v11 = vld [vmem:[#allocation9 + $0x70] sm:$0xff] }
  0x28   :  { %339 = vmatprep.subr.mxu0 %v86_v1  ;;  %348 = vmatprep.subr.mxu1 %v203_v10  ;;  %v201_v12 = vld [vmem:[#allocation9 + $0x68] sm:$0xff]  ;;  %v200_v13 = vld [vmem:[#allocation9 + $0x60] sm:$0xff]  ;;  %v199_v14 = vld [vmem:[#allocation9 + $0x58] sm:$0xff] }
  0x29   :  { %340 = vmatpush3.msra.mxu0 %v86_v1  ;;  %v75_v8 = vsel %vm74_vm0, %v72_v5, 0.0  ;;  %v78_v9 = vsel %vm74_vm0, %v73_v6, 0.0  ;;  %349 = vmatpush3.msra.mxu1 %v203_v10  ;;  %v198_v15 = vld [vmem:[#allocation9 + $0x50] sm:$0xff]  ;;  %v197_v16 = vld [vmem:[#allocation9 + $0x48] sm:$0xff]  ;;  %v196_v17 = vld [vmem:[#allocation9 + $0x40] sm:$0xff] }
  0x2a   :  { %341 = vmatprep.subr.mxu0 %v85_v4  ;;  %76 = vadd.xlane.f32.xlu0 %v75_v8  ;;  %v195_v18 = vld [vmem:[#allocation9 + $0x38] sm:$0xff]  ;;  %v194_v19 = vld [vmem:[#allocation9 + $0x30] sm:$0xff]  ;;  %v193_v20 = vld [vmem:[#allocation9 + $0x28] sm:$0xff] }
  0x2b   :  { %342 = vmatpush3.msra.mxu0 %v85_v4  ;;  %350 = vmatprep.subr.mxu1 %v202_v11  ;;  %v192_v21 = vld [vmem:[#allocation9 + $0x20] sm:$0xff]  ;;  %v191_v22 = vld [vmem:[#allocation9 + $0x18] sm:$0xff]  ;;  %v190_v23 = vld [vmem:[#allocation9 + $0x10] sm:$0xff] }
  0x2c   :  { %343 = vmatprep.subr.mxu0 %v84_v7  ;;  %351 = vmatpush3.msra.mxu1 %v202_v11  ;;  %v189_v24 = vld [vmem:[#allocation9 + $0x8] sm:$0xff]  ;;  %v188_v25 = vld [vmem:[#allocation9] sm:$0xff]  ;;  %v312_v30 = vld [vmem:[%s552_s3] ss:$0 sm:$0xff]  ;;  %s297_s3 = sshll.u32 %s484_s0, 4  ;;  %s298_s3 = int_to_ptr.vmem [resolvable:$true] %s297_s3 }
  0x2d   :  { %344 = vmatpush3.msra.mxu0 %v84_v7  ;;  %352 = vmatprep.subr.mxu1 %v201_v12  ;;  %s453_s11 = scalar_lea.vmem %s298_s3, 256  ;;  %p458_p2 = scmp.lt.s32.totalorder %s298_s3, %s298_s3 }
  0x2e   :  { %346 = vmatmul.mubr.msk.f32.vlgmr.msra.gmra.mxu0 %vm74_vm0, %v71_v3  ;;  %79 = vadd.xlane.f32.xlu0 %v78_v9  ;;  %p454_p1 = scmp.ne.s32.totalorder %s298_s3, %s453_s11  ;;  %p459_p3 = scmp.lt.s32.totalorder %s453_s11, %s453_s11 }
  0x2f   :  { %353 = vmatpush3.msra.mxu1 %v201_v12 }
  0x30   :  { %354 = vmatprep.subr.mxu1 %v200_v13  ;;  %p460_p4 = por %p459_p3, %p458_p2 }
  0x31   :  { %355 = vmatpush3.msra.mxu1 %v200_v13 }
  0x32   :  { %356 = vmatprep.subr.mxu1 %v199_v14  ;;  %p461_p5 = pnand %p460_p4, %p454_p1 }
  0x33   :  { %357 = vmatpush3.msra.mxu1 %v199_v14 }
  0x34   :  { %358 = vmatprep.subr.mxu1 %v198_v15 }
  0x35   :  { %359 = vmatpush3.msra.mxu1 %v198_v15 }
  0x36   :  { %360 = vmatprep.subr.mxu1 %v197_v16 }
  0x37   :  { %361 = vmatpush3.msra.mxu1 %v197_v16 }
  0x38   :  { %362 = vmatprep.subr.mxu1 %v196_v17 }
  0x39   :  { %363 = vmatpush3.msra.mxu1 %v196_v17 }
  0x3a   :  { %364 = vmatprep.subr.mxu1 %v195_v18 }
  0x3b   :  { %365 = vmatpush3.msra.mxu1 %v195_v18 }
  0x3c   :  { %366 = vmatprep.subr.mxu1 %v194_v19 }
  0x3d   :  { %367 = vmatpush3.msra.mxu1 %v194_v19 }
  0x3e   :  { %368 = vmatprep.subr.mxu1 %v193_v20 }
  0x3f   :  { %369 = vmatpush3.msra.mxu1 %v193_v20 }
  0x40   :  { %370 = vmatprep.subr.mxu1 %v192_v21 }
  0x41   :  { %371 = vmatpush3.msra.mxu1 %v192_v21 }
  0x42   :  { %372 = vmatprep.subr.mxu1 %v191_v22 }
  0x43   :  { %373 = vmatpush3.msra.mxu1 %v191_v22 }
  0x44   :  { %374 = vmatprep.subr.mxu1 %v190_v23 }
  0x45   :  { %375 = vmatpush3.msra.mxu1 %v190_v23 }
  0x46   :  { %376 = vmatprep.subr.mxu1 %v189_v24 }
  0x47   :  { %377 = vmatpush3.msra.mxu1 %v189_v24 }
  0x48   :  { %378 = vmatprep.subr.mxu1 %v188_v25 }
  0x49   :  { %379 = vmatpush3.msra.mxu1 %v188_v25 }
  0xb3   :  { %v77_v26 = vpop.xlane.xlu0 %76 }
  0xb4   :  { %v82_v31 = vmul.f32 %v81_v27, %v77_v26 }
  0xb6   :  { %v176_v35 = vadd.f32 %v312_v30, %v82_v31 }
  0xb7   :  { %v80_v28 = vpop.xlane.xlu0 %79 }
  0xb8   :  { %v83_v29 = vmul.f32 %v81_v27, %v80_v28 }
  0xba   :  { %v177_v32 = vadd.f32 %v312_v30, %v83_v29 }
  0xee   :  { %v347_v33 = vpop.f32.mrf.mxu0 }
  0xef   :  { %v179_v34 = vsub.f32 %v177_v32, %v347_v33 }
  0xf0   :  { %v160_v36 = vpop.f32.mrf.mxu0 }
  0xf1   :  { %v181_v37 = vmax.f32 %v179_v34, 0.0  ;;  %v178_v38 = vsub.f32 %v176_v35, %v160_v36 }
  0xf3   :  { %v183_v39 = vsub.f32 0.0, %v181_v37  ;;  %v180_v40 = vmax.f32 %v178_v38, 0.0 }
  0xf5   :  { %v182_v41 = vsub.f32 0.0, %v180_v40  ;;  %v186_v42 = vmul.f32 1.442695, %v183_v39 }
  0xf7   :  { %v184_v43 = vmul.f32 1.442695, %v182_v41 }
  0xf9   :  { %389 = vpow2.f32 %v184_v43 }
  0xfa   :  { %391 = vpow2.f32 %v186_v42 }
 0x106   :  { %v390_v44 = vpop.eup %389 }
 0x107   :  { %v392_v45 = vpop.eup %391  ;;  %380 = vmatprep.mubr.f32.mxu1 %v390_v44 }
 0x108   :  { %381 = vmatmul.mubr.f32.vlgmr.msra.gmra.mxu1 %v392_v45 }
 0x1c8   :  { %v382_v46 = vpop.f32.mrf.mxu1 }
 0x1c9   :  { %291 = vst [vmem:[#allocation10 + $0x8] sm:$0xff] %v382_v46 }
 0x1ca   :  { %v272_v47 = vpop.f32.mrf.mxu1 }
 0x1cb   :  { %290 = vst [vmem:[#allocation10] sm:$0xff] %v272_v47 }
 0x1cc   :  { %464 = shalt.err (!%p461_p5)
}
 0x1cd   :  { %303 = dma.vmem_to_hbm [thread:$0]  %s298_s3, 256, %s554_s5, [#allocation6], %s481_s23, %s481_s23, %s482_s24  }
 0x1ce   :  { %477 = dma.done.wait [#allocation6], 256  }
 0x1cf   :  { %478 = vsyncadd [#allocation6], 4294967040 }
 0x1d0   :  { %307 = vsyncpa [#allocation5], 1 }
 0x1d1   :  { %308 = vsyncpa [#allocation8], 1 }
 0x1d2   :  { %309 = vsyncpa [#allocation6], 1 }

</bundles_post_ra>
